<compile_context>
chip_gen: v6e
topology: v6e:2x2x1
jax: 0.10.0
libtpu: 0.0.40
codegen_flags: <defaults>
</compile_context>

<pallas_src>
import functools

import jax
import jax.numpy as jnp
import numpy as np
from jax.experimental import pallas as pl
from jax.experimental.pallas import tpu as pltpu

_MASK_NEG = -1e9  # finite "minus infinity": exp underflows to exactly 0 in f32


# ---------------------------------------------------------------------------
# Stage 1: fused Q/K/V projection kernel (full-width GEMMs, weights resident).
# ---------------------------------------------------------------------------
def _qkv_proj_kernel(q_ref, k_ref, v_ref,
                     wq_ref, bq_ref, wk_ref, bk_ref, wv_ref, bv_ref,
                     qo_ref, ko_ref, vo_ref, *, scale):
    f32 = jnp.float32
    # bf16 operands, f32 MXU accumulation; biases stay f32.
    qo_ref[...] = ((jnp.dot(q_ref[...], wq_ref[...], preferred_element_type=f32)
                    + bq_ref[...]) * jnp.float32(scale)).astype(qo_ref.dtype)
    ko_ref[...] = (jnp.dot(k_ref[...], wk_ref[...], preferred_element_type=f32)
                   + bk_ref[...]).astype(ko_ref.dtype)
    vo_ref[...] = (jnp.dot(v_ref[...], wv_ref[...], preferred_element_type=f32)
                   + bv_ref[...]).astype(vo_ref.dtype)


# ---------------------------------------------------------------------------
# Stage 2: attention kernel, one (query_tile, head) grid step.
# ---------------------------------------------------------------------------
def _bigbird_attn_kernel(
    q_ref,       # (TQ, d)   pre-scaled per-head queries, compute dtype
    kt_ref,      # (d,  N)   per-head keys, pre-transposed at projection time
    v_ref,       # (N,  d)   per-head values
    wo_ref,      # (d,  E)   per-head slab of the output projection
    bo_ref,      # (1,  E)   f32
    bias_ref,    # (TQ, N)   additive mask bias: 0 allowed / -1e9 masked
    out_ref,     # (TQ, E)   output (revisited across the head axis)
    acc_ref,     # (TQ, E)   f32 scratch accumulator
):
    f32 = jnp.float32
    h = pl.program_id(1)

    @pl.when(h == 0)
    def _init():
        acc_ref[...] = jnp.zeros_like(acc_ref)

    cd = q_ref.dtype  # compute dtype (bf16 by default)

    # logits: plain (TQ, d) @ (d, N) MXU matmul -- no in-kernel transpose.
    logits = jnp.dot(q_ref[...], kt_ref[...], preferred_element_type=f32)
    logits = logits + bias_ref[...].astype(f32)

    # Numerically-stable softmax.  Masked entries carry -1e9 and underflow to
    # exactly 0 after exp; every row keeps at least its own diagonal so the
    # row max is a real logit.
    m = jnp.max(logits, axis=-1, keepdims=True)
    e = jnp.exp(logits - m)
    denom = jnp.sum(e, axis=-1, keepdims=True)
    # NOTE: approx reciprocal (EUP slot) has ~1e-3 rel error -- fine for this
    # inference forward; swap to e / denom if reused for training.
    w = e * pl.reciprocal(denom, approx=True)

    attn = jnp.dot(w.astype(cd), v_ref[...], preferred_element_type=f32)  # (TQ, d)

    # Per-head contribution to the output projection (P3 accumulator over h).
    acc_ref[...] += jnp.dot(attn.astype(cd), wo_ref[...],
                            preferred_element_type=f32)

    @pl.when(h == pl.num_programs(1) - 1)
    def _finalize():
        out_ref[...] = (acc_ref[...] + bo_ref[...]).astype(out_ref.dtype)


# ---------------------------------------------------------------------------
# Python-side module: params, mask construction, pallas_call plumbing.
# ---------------------------------------------------------------------------
class BigBirdMultiHeadCrossAttentionPallas:
    def __init__(self, embed_dim, num_heads, global_tokens, num_random=3,
                 window_size=3, param_key=None, compute_dtype=jnp.bfloat16,
                 out_dtype=jnp.float32):
        assert embed_dim % num_heads == 0
        self.embed_dim = embed_dim
        self.num_heads = num_heads
        self.head_dim = embed_dim // num_heads
        self.global_tokens = list(global_tokens)
        self.num_random = num_random
        self.window_size = window_size
        self.compute_dtype = compute_dtype
        # out_dtype=bf16 halves the (N, E) HBM writeback if downstream allows.
        self.out_dtype = out_dtype
        self._mask_cache = {}

        E, H, d = embed_dim, num_heads, self.head_dim

        key = param_key if param_key is not None else jax.random.PRNGKey(0)
        keys = jax.random.split(key, 8)
        init = lambda k, shape: (0.02 * jax.random.normal(k, shape)).astype(jnp.float32)

        # f32 master weights, stored as (in, out) == PyTorch nn.Linear W^T.
        self.wq, self.bq = init(keys[0], (E, E)), init(keys[1], (1, E))
        self.wk, self.bk = init(keys[2], (E, E)), init(keys[3], (1, E))
        self.wv, self.bv = init(keys[4], (E, E)), init(keys[5], (1, E))
        self.wo, self.bo = init(keys[6], (E, E)), init(keys[7], (1, E))

        # Full-width projection weights in the MXU compute dtype (resident in
        # the projection kernel; DMA'd once).  Biases stay f32.
        self.wq_c = self.wq.astype(compute_dtype)
        self.wk_c = self.wk.astype(compute_dtype)
        self.wv_c = self.wv.astype(compute_dtype)
        # Per-head output-projection slabs (head axis leading -> lane-legal
        # BlockSpecs in the attention kernel).
        self.wo_h = self.wo.reshape(H, d, E).astype(compute_dtype)  # (H, d, E)

        # Device-aware tiling / VMEM budget (v7x: 64 MiB/TC, v5e/v6e: 128 MiB).
        try:
            self._vmem_cap = int(pltpu.get_tpu_info().vmem_capacity_bytes)
        except Exception:
            self._vmem_cap = 64 * 1024 * 1024  # conservative fallback
        self._vmem_limit = min(int(self._vmem_cap * 5 // 8), 96 * 1024 * 1024)

    def _pick_tile(self, n):
        # v5e/v6e: bigger tiles amortize per-step overhead; v7x: keep 128 and
        # rely on megacore sharding of the parallel qi axis.
        target = 256 if self._vmem_cap > (64 << 20) else 128
        if n % target == 0:
            return target
        if n % 128 == 0:
            return 128
        return n  # small sequences: full-extent block is always layout-legal

    # ------------------------------------------------------------------ mask
    def create_sparse_attention_mask(self, seq_len, rng_seed=0):
        """BigBird mask (global + window + random) and its additive-bias form.

        The PyTorch module re-draws the random tokens with np.random on every
        forward; here they are drawn once with a fixed-seed Generator and
        cached so the kernel is deterministic."""
        cache_key = (seq_len, rng_seed)
        if cache_key in self._mask_cache:
            return self._mask_cache[cache_key]

        rng = np.random.default_rng(rng_seed)
        mask = np.zeros((seq_len, seq_len), dtype=np.float32)
        for token in self.global_tokens:
            if token < seq_len:
                mask[token, :] = 1.0
                mask[:, token] = 1.0
        for i in range(seq_len):
            lo = max(0, i - self.window_size)
            hi = min(seq_len, i + self.window_size + 1)
            mask[i, lo:hi] = 1.0
        for i in range(seq_len):
            random_indices = rng.choice(
                seq_len, min(self.num_random, seq_len), replace=False)
            mask[i, random_indices] = 1.0

        bias = np.where(mask == 0.0, np.float32(_MASK_NEG),
                        np.float32(0.0)).astype(np.float32)
        mask_j = jnp.asarray(mask)
        bias_j = jnp.asarray(bias).astype(self.compute_dtype)  # bf16 HBM mask
        self._mask_cache[cache_key] = (mask_j, bias_j)
        return mask_j, bias_j

    # --------------------------------------------------------------- forward
    def __call__(self, query, key, value):
        N, E = query.shape
        assert E == self.embed_dim
        # The module's (N, N) mask (and its window diagonal) presumes equal
        # query/key lengths -- same assumption as the PyTorch forward.
        assert key.shape[0] == N and value.shape[0] == N

        H, d = self.num_heads, self.head_dim
        mask, bias = self.create_sparse_attention_mask(N)

        cd = self.compute_dtype
        itemsize_c = jnp.dtype(cd).itemsize
        q = query.astype(cd)
        k = key.astype(cd)
        v = value.astype(cd)

        # ---------------- Stage 1: hoisted Q/K/V projections -----------------
        ts = self._pick_tile(N)
        n_s = N // ts
        row_spec = pl.BlockSpec((ts, E), lambda si: (si, 0))
        w_spec = pl.BlockSpec((E, E), lambda si: (0, 0))   # constant -> DMA once
        b_spec = pl.BlockSpec((1, E), lambda si: (0, 0))

        proj_cost = pl.CostEstimate(
            flops=int(3 * 2 * N * E * E),
            transcendentals=0,
            bytes_accessed=int(2 * 3 * N * E * itemsize_c   # q/k/v in + out
                               + 3 * E * E * itemsize_c     # weights, once
                               + 3 * E * 4),                # f32 biases
        )

        q_p, k_p, v_p = pl.pallas_call(
            functools.partial(_qkv_proj_kernel, scale=float(1.0 / (d ** 0.5))),
            out_shape=(jax.ShapeDtypeStruct((N, E), cd),) * 3,
            grid_spec=pltpu.PrefetchScalarGridSpec(
                num_scalar_prefetch=0,
                grid=(n_s,),
                in_specs=[row_spec, row_spec, row_spec,
                          w_spec, b_spec, w_spec, b_spec, w_spec, b_spec],
                out_specs=[row_spec, row_spec, row_spec],
            ),
            compiler_params=pltpu.CompilerParams(
                dimension_semantics=("parallel",),
                vmem_limit_bytes=self._vmem_limit,
            ),
            cost_estimate=proj_cost,
        )(q, k, v, self.wq_c, self.bq, self.wk_c, self.bk, self.wv_c, self.bv)

        # Per-head layout plumbing (cheap one-shot XLA transposes): K is
        # pre-transposed here so the attention kernel never relayouts it.
        qh = q_p.reshape(N, H, d).transpose(1, 0, 2)   # (H, N, d), pre-scaled
        kt = k_p.reshape(N, H, d).transpose(1, 2, 0)   # (H, d, N)
        vh = v_p.reshape(N, H, d).transpose(1, 0, 2)   # (H, N, d)

        # ---------------- Stage 2: BigBird attention + output proj -----------
        tq = self._pick_tile(N)
        n_q = N // tq
        grid = (n_q, H)

        attn_cost = pl.CostEstimate(
            flops=int(4 * N * N * E            # logits + attn@V over all heads
                      + 2 * N * E * E),        # per-head output projection
            transcendentals=int(H * N * N      # exp
                                + H * N),      # approx reciprocal
            bytes_accessed=int(
                N * E * itemsize_c             # Qh, streamed once
                + 2 * n_q * N * E * itemsize_c # Kt + Vh, re-streamed per q tile
                + n_q * E * E * itemsize_c     # Wo[h] slabs, re-fetched per q tile
                + N * N * itemsize_c           # dense additive mask bias
                + E * 4                        # bo
                + N * E * jnp.dtype(self.out_dtype).itemsize),  # output write
        )

        out = pl.pallas_call(
            _bigbird_attn_kernel,
            out_shape=jax.ShapeDtypeStruct((N, E), self.out_dtype),
            grid_spec=pltpu.PrefetchScalarGridSpec(
                num_scalar_prefetch=0,
                grid=grid,
                in_specs=[
                    pl.BlockSpec((None, tq, d), lambda qi, h: (h, qi, 0)),  # Qh tile
                    pl.BlockSpec((None, d, N), lambda qi, h: (h, 0, 0)),    # Kt[h]
                    pl.BlockSpec((None, N, d), lambda qi, h: (h, 0, 0)),    # Vh[h]
                    pl.BlockSpec((None, d, E), lambda qi, h: (h, 0, 0)),    # Wo[h]
                    pl.BlockSpec((1, E), lambda qi, h: (0, 0)),             # bo
                    pl.BlockSpec((tq, N), lambda qi, h: (qi, 0)),           # mask bias
                ],
                out_specs=pl.BlockSpec((tq, E), lambda qi, h: (qi, 0)),
                scratch_shapes=[pltpu.VMEM((tq, E), jnp.float32)],
            ),
            compiler_params=pltpu.CompilerParams(
                dimension_semantics=("parallel", "arbitrary"),
                vmem_limit_bytes=self._vmem_limit,
            ),
            cost_estimate=attn_cost,
        )(qh, kt, vh, self.wo_h, self.bo, bias)
        return out, mask

    # Pure-JAX f32 reference mirroring the PyTorch forward (for checking).
    def reference(self, query, key, value, mask):
        N, E = query.shape
        H, d = self.num_heads, self.head_dim
        Q = (query @ self.wq + self.bq).reshape(N, H, d).transpose(1, 0, 2)
        K = (key @ self.wk + self.bk).reshape(N, H, d).transpose(1, 0, 2)
        V = (value @ self.wv + self.bv).reshape(N, H, d).transpose(1, 0, 2)
        logits = jnp.einsum("hnd,hmd->hnm", Q, K) / (d ** 0.5)
        logits = jnp.where(mask[None, :, :] == 0, -jnp.inf, logits)
        w = jax.nn.softmax(logits, axis=-1)
        attn = jnp.einsum("hnm,hmd->hnd", w, V)
        attn = attn.transpose(1, 0, 2).reshape(N, E)
        return attn @ self.wo + self.bo


if __name__ == "__main__":
    # Small shapes consistent with the module's forward: (N, embed_dim).
    N = 8
    EMBED_DIM = 32
    NUM_HEADS = 4

    module = BigBirdMultiHeadCrossAttentionPallas(
        embed_dim=EMBED_DIM,
        num_heads=NUM_HEADS,
        global_tokens=[0],
        num_random=3,
        window_size=3,
        param_key=jax.random.PRNGKey(42),
    )

    key = jax.random.PRNGKey(0)
    kq, kk, kv = jax.random.split(key, 3)
    query = jax.random.normal(kq, (N, EMBED_DIM), dtype=jnp.float32)
    key_t = jax.random.normal(kk, (N, EMBED_DIM), dtype=jnp.float32)
    value = jax.random.normal(kv, (N, EMBED_DIM), dtype=jnp.float32)

    out, mask = module(query, key_t, value)
    out = jax.block_until_ready(out)

    ref = module.reference(query, key_t, value, mask)
    # Kernel runs bf16 operands / f32 accumulation; reference is full f32.
    np.testing.assert_allclose(np.asarray(out), np.asarray(ref),
                               rtol=5e-2, atol=5e-3)

    print("KERNEL_OK")
</pallas_src>

<mosaic_0001>
module attributes {stable_mosaic.version = 11 : i64} {
  func.func @_qkv_proj_kernel(%arg0: i32, %arg1: memref<8x32xbf16, #tpu.memory_space<vmem>>, %arg2: memref<8x32xbf16, #tpu.memory_space<vmem>>, %arg3: memref<8x32xbf16, #tpu.memory_space<vmem>>, %arg4: memref<32x32xbf16, #tpu.memory_space<vmem>>, %arg5: memref<1x32xf32, #tpu.memory_space<vmem>>, %arg6: memref<32x32xbf16, #tpu.memory_space<vmem>>, %arg7: memref<1x32xf32, #tpu.memory_space<vmem>>, %arg8: memref<32x32xbf16, #tpu.memory_space<vmem>>, %arg9: memref<1x32xf32, #tpu.memory_space<vmem>>, %arg10: memref<8x32xbf16, #tpu.memory_space<vmem>>, %arg11: memref<8x32xbf16, #tpu.memory_space<vmem>>, %arg12: memref<8x32xbf16, #tpu.memory_space<vmem>>) attributes {dimension_semantics = [#tpu.dimension_semantics<parallel>], iteration_bounds = array<i64: 1>, scalar_prefetch = 0 : i64, scratch_operands = 0 : i64, tpu.core_type = #tpu.core_type<tc>, window_params = [{transform_indices = @transform_0, window_bounds = array<i64: 8, 32>}, {transform_indices = @transform_1, window_bounds = array<i64: 8, 32>}, {transform_indices = @transform_2, window_bounds = array<i64: 8, 32>}, {pipeline_mode = #tpu.pipeline_mode<synchronous>, transform_indices = @transform_3, window_bounds = array<i64: 32, 32>}, {pipeline_mode = #tpu.pipeline_mode<synchronous>, transform_indices = @transform_4, window_bounds = array<i64: 1, 32>}, {pipeline_mode = #tpu.pipeline_mode<synchronous>, transform_indices = @transform_5, window_bounds = array<i64: 32, 32>}, {pipeline_mode = #tpu.pipeline_mode<synchronous>, transform_indices = @transform_6, window_bounds = array<i64: 1, 32>}, {pipeline_mode = #tpu.pipeline_mode<synchronous>, transform_indices = @transform_7, window_bounds = array<i64: 32, 32>}, {pipeline_mode = #tpu.pipeline_mode<synchronous>, transform_indices = @transform_8, window_bounds = array<i64: 1, 32>}, {transform_indices = @transform_9, window_bounds = array<i64: 8, 32>}, {transform_indices = @transform_10, window_bounds = array<i64: 8, 32>}, {transform_indices = @transform_11, window_bounds = array<i64: 8, 32>}]} {
    %c0 = arith.constant 0 : index
    %c0_0 = arith.constant 0 : index
    %0 = vector.load %arg1[%c0, %c0_0] : memref<8x32xbf16, #tpu.memory_space<vmem>>, vector<8x32xbf16>
    %c0_1 = arith.constant 0 : index
    %c0_2 = arith.constant 0 : index
    %1 = vector.load %arg4[%c0_1, %c0_2] : memref<32x32xbf16, #tpu.memory_space<vmem>>, vector<32x32xbf16>
    %cst = arith.constant dense<0.000000e+00> : vector<8x32xf32>
    %2 = tpu.matmul %0, %1, %cst {dimension_numbers = #tpu.dot_dimension_numbers<[1], [0], [0], [1], [0, 0, 1, 1], [], []>} : vector<8x32xbf16>, vector<32x32xbf16>, vector<8x32xf32> -> vector<8x32xf32>
    %c0_3 = arith.constant 0 : index
    %c0_4 = arith.constant 0 : index
    %3 = vector.load %arg5[%c0_3, %c0_4] : memref<1x32xf32, #tpu.memory_space<vmem>>, vector<1x32xf32>
    %4 = vector.broadcast %3 : vector<1x32xf32> to vector<8x32xf32>
    %5 = arith.addf %2, %4 : vector<8x32xf32>
    %cst_5 = arith.constant 0.353553385 : f32
    %6 = vector.broadcast %cst_5 : f32 to vector<8x32xf32>
    %7 = arith.mulf %5, %6 : vector<8x32xf32>
    %8 = arith.truncf %7 : vector<8x32xf32> to vector<8x32xbf16>
    %c0_6 = arith.constant 0 : index
    %c0_7 = arith.constant 0 : index
    %9 = vector.load %arg10[%c0_6, %c0_7] : memref<8x32xbf16, #tpu.memory_space<vmem>>, vector<8x32xbf16>
    tpu.vector_store %arg10[%c0_6, %c0_7], %8 {strides = array<i32>} : memref<8x32xbf16, #tpu.memory_space<vmem>>, vector<8x32xbf16>,
    %c0_8 = arith.constant 0 : index
    %c0_9 = arith.constant 0 : index
    %10 = vector.load %arg2[%c0_8, %c0_9] : memref<8x32xbf16, #tpu.memory_space<vmem>>, vector<8x32xbf16>
    %c0_10 = arith.constant 0 : index
    %c0_11 = arith.constant 0 : index
    %11 = vector.load %arg6[%c0_10, %c0_11] : memref<32x32xbf16, #tpu.memory_space<vmem>>, vector<32x32xbf16>
    %cst_12 = arith.constant dense<0.000000e+00> : vector<8x32xf32>
    %12 = tpu.matmul %10, %11, %cst_12 {dimension_numbers = #tpu.dot_dimension_numbers<[1], [0], [0], [1], [0, 0, 1, 1], [], []>} : vector<8x32xbf16>, vector<32x32xbf16>, vector<8x32xf32> -> vector<8x32xf32>
    %c0_13 = arith.constant 0 : index
    %c0_14 = arith.constant 0 : index
    %13 = vector.load %arg7[%c0_13, %c0_14] : memref<1x32xf32, #tpu.memory_space<vmem>>, vector<1x32xf32>
    %14 = vector.broadcast %13 : vector<1x32xf32> to vector<8x32xf32>
    %15 = arith.addf %12, %14 : vector<8x32xf32>
    %16 = arith.truncf %15 : vector<8x32xf32> to vector<8x32xbf16>
    %c0_15 = arith.constant 0 : index
    %c0_16 = arith.constant 0 : index
    %17 = vector.load %arg11[%c0_15, %c0_16] : memref<8x32xbf16, #tpu.memory_space<vmem>>, vector<8x32xbf16>
    tpu.vector_store %arg11[%c0_15, %c0_16], %16 {strides = array<i32>} : memref<8x32xbf16, #tpu.memory_space<vmem>>, vector<8x32xbf16>,
    %c0_17 = arith.constant 0 : index
    %c0_18 = arith.constant 0 : index
    %18 = vector.load %arg3[%c0_17, %c0_18] : memref<8x32xbf16, #tpu.memory_space<vmem>>, vector<8x32xbf16>
    %c0_19 = arith.constant 0 : index
    %c0_20 = arith.constant 0 : index
    %19 = vector.load %arg8[%c0_19, %c0_20] : memref<32x32xbf16, #tpu.memory_space<vmem>>, vector<32x32xbf16>
    %cst_21 = arith.constant dense<0.000000e+00> : vector<8x32xf32>
    %20 = tpu.matmul %18, %19, %cst_21 {dimension_numbers = #tpu.dot_dimension_numbers<[1], [0], [0], [1], [0, 0, 1, 1], [], []>} : vector<8x32xbf16>, vector<32x32xbf16>, vector<8x32xf32> -> vector<8x32xf32>
    %c0_22 = arith.constant 0 : index
    %c0_23 = arith.constant 0 : index
    %21 = vector.load %arg9[%c0_22, %c0_23] : memref<1x32xf32, #tpu.memory_space<vmem>>, vector<1x32xf32>
    %22 = vector.broadcast %21 : vector<1x32xf32> to vector<8x32xf32>
    %23 = arith.addf %20, %22 : vector<8x32xf32>
    %24 = arith.truncf %23 : vector<8x32xf32> to vector<8x32xbf16>
    %c0_24 = arith.constant 0 : index
    %c0_25 = arith.constant 0 : index
    %25 = vector.load %arg12[%c0_24, %c0_25] : memref<8x32xbf16, #tpu.memory_space<vmem>>, vector<8x32xbf16>
    tpu.vector_store %arg12[%c0_24, %c0_25], %24 {strides = array<i32>} : memref<8x32xbf16, #tpu.memory_space<vmem>>, vector<8x32xbf16>,
    return
  }
  func.func @transform_0(%arg0: i32) -> (i32, i32) {
    %c0_i32 = arith.constant 0 : i32
    %c0_i32_0 = arith.constant 0 : i32
    return %arg0, %c0_i32 : i32, i32
  }
  func.func @transform_1(%arg0: i32) -> (i32, i32) {
    %c0_i32 = arith.constant 0 : i32
    %c0_i32_0 = arith.constant 0 : i32
    return %arg0, %c0_i32 : i32, i32
  }
  func.func @transform_2(%arg0: i32) -> (i32, i32) {
    %c0_i32 = arith.constant 0 : i32
    %c0_i32_0 = arith.constant 0 : i32
    return %arg0, %c0_i32 : i32, i32
  }
  func.func @transform_3(%arg0: i32) -> (i32, i32) {
    %c0_i32 = arith.constant 0 : i32
    %c0_i32_0 = arith.constant 0 : i32
    %c0_i32_1 = arith.constant 0 : i32
    return %c0_i32, %c0_i32_0 : i32, i32
  }
  func.func @transform_4(%arg0: i32) -> (i32, i32) {
    %c0_i32 = arith.constant 0 : i32
    %c0_i32_0 = arith.constant 0 : i32
    %c0_i32_1 = arith.constant 0 : i32
    return %c0_i32, %c0_i32_0 : i32, i32
  }
  func.func @transform_5(%arg0: i32) -> (i32, i32) {
    %c0_i32 = arith.constant 0 : i32
    %c0_i32_0 = arith.constant 0 : i32
    %c0_i32_1 = arith.constant 0 : i32
    return %c0_i32, %c0_i32_0 : i32, i32
  }
  func.func @transform_6(%arg0: i32) -> (i32, i32) {
    %c0_i32 = arith.constant 0 : i32
    %c0_i32_0 = arith.constant 0 : i32
    %c0_i32_1 = arith.constant 0 : i32
    return %c0_i32, %c0_i32_0 : i32, i32
  }
  func.func @transform_7(%arg0: i32) -> (i32, i32) {
    %c0_i32 = arith.constant 0 : i32
    %c0_i32_0 = arith.constant 0 : i32
    %c0_i32_1 = arith.constant 0 : i32
    return %c0_i32, %c0_i32_0 : i32, i32
  }
  func.func @transform_8(%arg0: i32) -> (i32, i32) {
    %c0_i32 = arith.constant 0 : i32
    %c0_i32_0 = arith.constant 0 : i32
    %c0_i32_1 = arith.constant 0 : i32
    return %c0_i32, %c0_i32_0 : i32, i32
  }
  func.func @transform_9(%arg0: i32) -> (i32, i32) {
    %c0_i32 = arith.constant 0 : i32
    %c0_i32_0 = arith.constant 0 : i32
    return %arg0, %c0_i32 : i32, i32
  }
  func.func @transform_10(%arg0: i32) -> (i32, i32) {
    %c0_i32 = arith.constant 0 : i32
    %c0_i32_0 = arith.constant 0 : i32
    return %arg0, %c0_i32 : i32, i32
  }
  func.func @transform_11(%arg0: i32) -> (i32, i32) {
    %c0_i32 = arith.constant 0 : i32
    %c0_i32_0 = arith.constant 0 : i32
    return %arg0, %c0_i32 : i32, i32
  }
}

</mosaic_0001>

<bundles_post_ra>
// kernel: tpu_custom_call.1
= control target key start
LH: loop header
LB: loop body
LE: loop exit
PB: predicated region body
PF: predicated region fallthrough
CT: control target
= control target key end

     0   :  { %17 = vsyncpa [#allocation3], 0  ;;  %s749_s0 = inlined_call_operand.hbm [shape: bf16[8,32], index: 0, kind: input, shape index: {}]   ;;  %s750_s1 = inlined_call_operand.hbm [shape: bf16[8,32], index: 1, kind: input, shape index: {}]   ;;  %s751_s2 = inlined_call_operand.hbm [shape: bf16[8,32], index: 2, kind: input, shape index: {}]   ;;  %s752_s3 = inlined_call_operand.hbm [shape: bf16[32,32], index: 3, kind: input, shape index: {}]   ;;  %s753_s4 = inlined_call_operand.vmem [shape: f32[1,32], index: 4, kind: input, shape index: {}]   ;;  %s754_s5 = inlined_call_operand.hbm [shape: bf16[32,32], index: 5, kind: input, shape index: {}]   ;;  %s755_s6 = inlined_call_operand.vmem [shape: f32[1,32], index: 6, kind: input, shape index: {}]   ;;  %s756_s7 = inlined_call_operand.hbm [shape: bf16[32,32], index: 7, kind: input, shape index: {}]   ;;  %s757_s8 = inlined_call_operand.vmem [shape: f32[1,32], index: 8, kind: input, shape index: {}]   ;;  %s758_s9 = inlined_call_operand.hbm [shape: bf16[8,32], index: 9, kind: output, shape index: {0}]   ;;  %s759_s10 = inlined_call_operand.hbm [shape: bf16[8,32], index: 10, kind: output, shape index: {1}]   ;;  %s760_s11 = inlined_call_operand.hbm [shape: bf16[8,32], index: 11, kind: output, shape index: {2}]  }
   0x1   :  { %18 = vsyncpa [#allocation6], 0 }
   0x2   :  { %19 = vsyncpa [#allocation9], 0 }
   0x3   :  { %20 = vsyncpa [#allocation12], 0 }
   0x4   :  { %21 = vsyncpa [#allocation4], 0 }
   0x5   :  { %22 = vsyncpa [#allocation15], 0  ;;  %s625_s17 = smov [#allocation5]   ;;  %s626_s19 = smov [#allocation8]  }
   0x6   :  { %s39_s18 = sshll.u32 %s625_s17, 4  ;;  %s58_s20 = sshll.u32 %s626_s19, 4  ;;  %s40_s18 = int_to_ptr.vmem [resolvable:$true] %s39_s18  ;;  %s59_s20 = int_to_ptr.vmem [resolvable:$true] %s58_s20 }
   0x7   :  { %s441_s21 = scalar_lea.vmem %s40_s18, 64  ;;  %p446_p1 = scmp.lt.s32.totalorder %s40_s18, %s40_s18 }
   0x8   :  { %p442_p0 = scmp.ne.s32.totalorder %s40_s18, %s441_s21  ;;  %p447_p2 = scmp.lt.s32.totalorder %s441_s21, %s441_s21 }
   0xa   :  { %p448_p3 = por %p447_p2, %p446_p1 }
   0xc   :  { %p449_p4 = pnand %p448_p3, %p442_p0 }
   0xe   :  { %452 = shalt.err (!%p449_p4)
}
   0xf   :  { %42 = dma.hbm_to_vmem [thread:$0]  %s750_s1, 64, %s40_s18, [#allocation6]  }
  0x10   :  { %s461_s24 = scalar_lea.vmem %s59_s20, 256  ;;  %p466_p6 = scmp.lt.s32.totalorder %s59_s20, %s59_s20 }
  0x11   :  { %p462_p5 = scmp.ne.s32.totalorder %s59_s20, %s461_s24  ;;  %p467_p7 = scmp.lt.s32.totalorder %s461_s24, %s461_s24 }
  0x13   :  { %p468_p8 = por %p467_p7, %p466_p6 }
  0x15   :  { %p469_p9 = pnand %p468_p8, %p462_p5 }
  0x17   :  { %472 = shalt.err (!%p469_p9)
}
  0x18   :  { %s627_s25 = smov 64   ;;  %s628_s26 = smov 4  }
  0x19   :  { %64 = dma.hbm_to_vmem [thread:$0]  %s752_s3, 256, %s59_s20, [#allocation9], %s627_s25, %s627_s25, %s628_s26  }
  0x1a   :  { %s629_s29 = smov [#allocation2]   ;;  %s630_s12 = smov [#allocation7]  }
  0x1b   :  { %s29_s30 = sshll.u32 %s629_s29, 4  ;;  %s49_s1 = sshll.u32 %s630_s12, 4  ;;  %s30_s30 = int_to_ptr.vmem [resolvable:$true] %s29_s30  ;;  %s50_s1 = int_to_ptr.vmem [resolvable:$true] %s49_s1 }
  0x1c   :  { %s481_s13 = scalar_lea.vmem %s30_s30, 64  ;;  %p486_p11 = scmp.lt.s32.totalorder %s30_s30, %s30_s30 }
  0x1d   :  { %p482_p10 = scmp.ne.s32.totalorder %s30_s30, %s481_s13  ;;  %p487_p12 = scmp.lt.s32.totalorder %s481_s13, %s481_s13 }
  0x1f   :  { %p488_p13 = por %p487_p12, %p486_p11 }
  0x21   :  { %p489_p0 = pnand %p488_p13, %p482_p10 }
  0x23   :  { %492 = shalt.err (!%p489_p0)
}
  0x24   :  { %32 = dma.hbm_to_vmem [thread:$0]  %s749_s0, 64, %s30_s30, [#allocation3]  }
  0x25   :  { %s501_s16 = scalar_lea.vmem %s50_s1, 64  ;;  %p506_p2 = scmp.lt.s32.totalorder %s50_s1, %s50_s1 }
  0x26   :  { %p502_p1 = scmp.ne.s32.totalorder %s50_s1, %s501_s16  ;;  %p507_p3 = scmp.lt.s32.totalorder %s501_s16, %s501_s16 }
  0x28   :  { %p508_p4 = por %p507_p3, %p506_p2 }
  0x2a   :  { %p509_p5 = pnand %p508_p4, %p502_p1 }
  0x2c   :  { %512 = shalt.err (!%p509_p5)
}
  0x2d   :  { %52 = dma.hbm_to_vmem [thread:$0]  %s751_s2, 64, %s50_s1, [#allocation6]  }
  0x2e   :  { %s631_s18 = smov [#allocation10]   ;;  %s632_s20 = smov [#allocation11]  }
  0x2f   :  { %s72_s19 = sshll.u32 %s631_s18, 4  ;;  %s86_s21 = sshll.u32 %s632_s20, 4  ;;  %s73_s19 = int_to_ptr.vmem [resolvable:$true] %s72_s19  ;;  %s87_s21 = int_to_ptr.vmem [resolvable:$true] %s86_s21 }
  0x30   :  { %s521_s22 = scalar_lea.vmem %s73_s19, 256  ;;  %p526_p7 = scmp.lt.s32.totalorder %s73_s19, %s73_s19 }
  0x31   :  { %p522_p6 = scmp.ne.s32.totalorder %s73_s19, %s521_s22  ;;  %p527_p8 = scmp.lt.s32.totalorder %s521_s22, %s521_s22 }
  0x33   :  { %p528_p9 = por %p527_p8, %p526_p7 }
  0x35   :  { %p529_p10 = pnand %p528_p9, %p522_p6 }
  0x37   :  { %532 = shalt.err (!%p529_p10)
}
  0x38   :  { %78 = dma.hbm_to_vmem [thread:$0]  %s754_s5, 256, %s73_s19, [#allocation9], %s627_s25, %s627_s25, %s628_s26  }
  0x39   :  { %s541_s2 = scalar_lea.vmem %s87_s21, 256  ;;  %p546_p12 = scmp.lt.s32.totalorder %s87_s21, %s87_s21 }
  0x3a   :  { %p542_p11 = scmp.ne.s32.totalorder %s87_s21, %s541_s2  ;;  %p547_p13 = scmp.lt.s32.totalorder %s541_s2, %s541_s2 }
  0x3c   :  { %p548_p0 = por %p547_p13, %p546_p12 }
  0x3e   :  { %p549_p1 = pnand %p548_p0, %p542_p11 }
  0x40   :  { %552 = shalt.err (!%p549_p1)
}
  0x41   :  { %92 = dma.hbm_to_vmem [thread:$0]  %s756_s7, 256, %s87_s21, [#allocation12], %s627_s25, %s627_s25, %s628_s26  }
  0x42   :  { %613 = dma.done.wait [#allocation3], 64  }
  0x43   :  { %614 = vsyncadd [#allocation3], 4294967232 }
  0x44   :  { %615 = dma.done.wait [#allocation6], 128  }
  0x45   :  { %616 = vsyncadd [#allocation6], 4294967168 }
  0x46   :  { %617 = dma.done.wait [#allocation9], 512  }
  0x47   :  { %618 = vsyncadd [#allocation9], 4294966784 }
  0x48   :  { %619 = dma.done.wait [#allocation12], 256  }
  0x49   :  { %620 = vsyncadd [#allocation12], 4294967040  ;;  %v633_v0 = vmov 0.0   ;;  %vm634_vm0 = vmmov 0   ;;  %v427_v1 = vld [vmem:[#allocation8 + $0x8] sm:$0xff]   ;;  %v428_v2 = vld [vmem:[#allocation10 + $0x8] sm:$0xff]  }
  0x4a   :  { %390 = vmatprep.subr.bf16.mxu0 %v633_v0  ;;  %398 = vmatprep.subr.bf16.mxu1 %v633_v0  ;;  %v429_v3 = vld [vmem:[#allocation8] sm:$0xff]   ;;  %v430_v4 = vld [vmem:[#allocation10] sm:$0xff]   ;;  %vm138_vm1 = vcmask 261120   ;;  %v431_v6 = vld [vmem:[#allocation11 + $0x8] sm:$0xff]   ;;  %s635_s28 = smov [#allocation14]   ;;  %s636_s30 = smov [#allocation13]  }
  0x4b   :  { %394 = vmatprep.mubr.msk.bf16.mxu0 %vm634_vm0, %v633_v0  ;;  %402 = vmatprep.mubr.msk.bf16.mxu1 %vm634_vm0, %v633_v0  ;;  %v114_v5 = vld [vmem:[#allocation2] sm:$0xf]  ;;  %v186_v7 = vld [vmem:[#allocation5] sm:$0xf]  ;;  %v432_v8 = vld [vmem:[#allocation11] sm:$0xff]   ;;  %s340_s29 = sshll.u32 %s635_s28, 4  ;;  %s341_s29 = int_to_ptr.vmem [resolvable:$true] %s340_s29 }
  0x4c   :  { %391 = vmatpush3.bf16.msra.mxu0 %v427_v1  ;;  %399 = vmatpush3.bf16.msra.mxu1 %v428_v2  ;;  %v255_v9 = vld [vmem:[#allocation7] sm:$0xf]  ;;  %v369_v10 = vld [vmem:[%s753_s4] ss:$0 sm:$0xff]  ;;  %s330_s12 = sshll.u32 %s636_s30, 4  ;;  %vm184_vm2 = vcmask 257024   ;;  %p558_p3 = scmp.lt.s32.totalorder %s341_s29, %s341_s29  ;;  %s331_s12 = int_to_ptr.vmem [resolvable:$true] %s330_s12 }
  0x4d   :  { %392 = vmatprep.subr.bf16.mxu0 %v633_v0  ;;  %400 = vmatprep.subr.bf16.mxu1 %v633_v0  ;;  %v373_v11 = vld [vmem:[%s755_s6] ss:$0 sm:$0xff]  ;;  %s637_s1 = smov [#allocation16]   ;;  %s553_s14 = scalar_lea.vmem %s341_s29, 64 }
  0x4e   :  { %v377_v24 = vld [vmem:[%s757_s8] ss:$0 sm:$0xff]  ;;  %s350_s13 = sshll.u32 %s637_s1, 4  ;;  %p554_p2 = scmp.ne.s32.totalorder %s341_s29, %s553_s14  ;;  %s351_s13 = int_to_ptr.vmem [resolvable:$true] %s350_s13 }
  0x4f   :  { %p559_p4 = scmp.lt.s32.totalorder %s553_s14, %s553_s14 }
  0x50   :  { %393 = vmatpush3.bf16.msra.mxu0 %v429_v3  ;;  %401 = vmatpush3.bf16.msra.mxu1 %v430_v4 }
  0x51   :  { %406 = vmatprep.subr.bf16.mxu0 %v633_v0  ;;  %p560_p5 = por %p559_p4, %p558_p3 }
  0x53   :  { %395 = vmatmul.mubr.msk.bf16.vlgmr.msra.gmra.mxu0 %vm138_vm1, %v114_v5  ;;  %403 = vmatmul.mubr.msk.bf16.vlgmr.msra.gmra.mxu1 %vm138_vm1, %v186_v7  ;;  %p561_p6 = pnand %p560_p5, %p554_p2 }
  0x54   :  { %407 = vmatpush3.bf16.msra.mxu0 %v431_v6  ;;  %410 = vmatprep.mubr.msk.bf16.mxu0 %vm634_vm0, %v633_v0 }
  0x55   :  { %408 = vmatprep.subr.bf16.mxu0 %v633_v0 }
  0x58   :  { %409 = vmatpush3.bf16.msra.mxu0 %v432_v8 }
  0x5b   :  { %411 = vmatmul.mubr.msk.bf16.vlgmr.msra.gmra.mxu0 %vm138_vm1, %v255_v9 }
 0x113   :  { %v176_v12 = vpop.f32.mrf.mxu0  ;;  %v247_v14 = vpop.f32.mrf.mxu1 }
 0x114   :  { %v177_v13 = vadd.f32 %v369_v10, %v176_v12  ;;  %v248_v16 = vadd.f32 %v373_v11, %v247_v14 }
 0x115   :  { %v396_v15 = vpop.f32.mrf.mxu0  ;;  %v404_v18 = vpop.f32.mrf.mxu1 }
 0x116   :  { %v182_v17 = vmul.f32 0.35355338, %v177_v13  ;;  %v253_v19 = vpack.c.bf16 %v248_v16, %v248_v16 }
 0x117   :  { %v179_v20 = vpop.f32.mrf.mxu0  ;;  %v250_v22 = vpop.f32.mrf.mxu1 }
 0x118   :  { %v183_v21 = vpack.c.bf16 %v182_v17, %v182_v17  ;;  %254 = vst.msk [vmem:[#allocation14] sm:$0xf] %vm184_vm2, %v253_v19 }
 0x119   :  { %v397_v23 = vpop.f32.mrf.mxu0  ;;  %v405_v25 = vpop.f32.mrf.mxu1 }
 0x11a   :  { %564 = shalt.err (!%p561_p6)
}
 0x11b   :  { %343 = dma.vmem_to_hbm [thread:$0]  %s341_s29, 64, %s759_s10, [#allocation15]   ;;  %185 = vst.msk [vmem:[#allocation13] sm:$0xf] %vm184_vm2, %v183_v21  ;;  %v316_v26 = vpop.f32.mrf.mxu0 }
 0x11c   :  { %s573_s8 = scalar_lea.vmem %s331_s12, 64  ;;  %p578_p8 = scmp.lt.s32.totalorder %s331_s12, %s331_s12 }
 0x11d   :  { %p574_p7 = scmp.ne.s32.totalorder %s331_s12, %s573_s8  ;;  %p579_p9 = scmp.lt.s32.totalorder %s573_s8, %s573_s8 }
 0x11f   :  { %p580_p10 = por %p579_p9, %p578_p8 }
 0x121   :  { %p581_p11 = pnand %p580_p10, %p574_p7 }
 0x123   :  { %584 = shalt.err (!%p581_p11)
}
 0x124   :  { %333 = dma.vmem_to_hbm [thread:$0]  %s331_s12, 64, %s758_s9, [#allocation4]   ;;  %v317_v27 = vadd.f32 %v377_v24, %v316_v26  ;;  %v412_v28 = vpop.f32.mrf.mxu0 }
 0x125   :  { %s593_s10 = scalar_lea.vmem %s351_s13, 64  ;;  %p598_p13 = scmp.lt.s32.totalorder %s351_s13, %s351_s13 }
 0x126   :  { %v322_v29 = vpack.c.bf16 %v317_v27, %v317_v27  ;;  %v319_v30 = vpop.f32.mrf.mxu0  ;;  %p594_p12 = scmp.ne.s32.totalorder %s351_s13, %s593_s10  ;;  %p599_p0 = scmp.lt.s32.totalorder %s593_s10, %s593_s10 }
 0x128   :  { %323 = vst.msk [vmem:[#allocation16] sm:$0xf] %vm184_vm2, %v322_v29  ;;  %v413_v31 = vpop.f32.mrf.mxu0  ;;  %p600_p1 = por %p599_p0, %p598_p13 }
 0x12a   :  { %p601_p2 = pnand %p600_p1, %p594_p12 }
 0x12c   :  { %604 = shalt.err (!%p601_p2)
}
 0x12d   :  { %353 = dma.vmem_to_hbm [thread:$0]  %s351_s13, 64, %s760_s11, [#allocation15]  }
 0x12e   :  { %621 = dma.done.wait [#allocation4], 64  }
 0x12f   :  { %622 = vsyncadd [#allocation4], 4294967232 }
 0x130   :  { %623 = dma.done.wait [#allocation15], 128  }
 0x131   :  { %624 = vsyncadd [#allocation15], 4294967168 }
 0x132   :  { %363 = vsyncpa [#allocation3], 1 }
 0x133   :  { %364 = vsyncpa [#allocation6], 1 }
 0x134   :  { %365 = vsyncpa [#allocation9], 1 }
 0x135   :  { %366 = vsyncpa [#allocation12], 1 }
 0x136   :  { %367 = vsyncpa [#allocation4], 1 }
 0x137   :  { %368 = vsyncpa [#allocation15], 1 }

</bundles_post_ra>
